<compile_context>
chip_gen: v7x
topology: tpu7x:2x2x1
jax: 0.10.0
libtpu: 0.0.40
codegen_flags: <defaults>
</compile_context>

<pallas_src>
import functools

import jax
import jax.numpy as jnp
from jax.experimental import pallas as pl
from jax.experimental.pallas import tpu as pltpu


def _basic_block_kernel(x_ref, w1_ref, s1_ref, b1_ref, w2_ref, s2_ref, b2_ref,
                        out_ref, *, H, WC, TBH):
    """Fused BasicBlock for a batch tile of TB = TBH // H images.

    x_ref:   (TBH, WC)    f32  lane-dense activation slab (TB images x H rows).
    w*_ref:  (WC, 3*WC)   bf16 block-banded conv weights; column block dy holds
                               the banded matrix for vertical tap dy in {0,1,2}.
    s*/b*:   (1, WC)      f32  folded BatchNorm scale / bias (tiled over W).
    out_ref: (TBH, WC)    f32.
    """
    f32 = jnp.float32
    bf16 = jnp.bfloat16

    # Per-row masks that zero the vertical taps at image top/bottom boundaries
    # (this replaces the zero halo rows of the old padded-slab formulation and
    # also prevents bleeding between the TB images stacked in the slab).
    rin = jax.lax.broadcasted_iota(jnp.int32, (TBH, 1), 0) % H
    top_keep = (rin != 0).astype(f32)        # x[r-1] tap invalid at image row 0
    bot_keep = (rin != H - 1).astype(f32)    # x[r+1] tap invalid at image row H-1

    def conv3x3(x_bf16, w_ref):
        # Single MXU matmul per conv: (TBH, WC) @ (WC, 3*WC), f32 accumulation.
        # The vertical shift of the dy=0 / dy=2 contributions is done on the f32
        # result with XLU sublane rotates (free slot vs. VPU) + boundary masks.
        y = jnp.dot(x_bf16, w_ref[...], preferred_element_type=f32)   # (TBH, 3*WC)
        y_up = pltpu.roll(y[:, 0 * WC:1 * WC], shift=1, axis=0)         # -> Y0[r-1]
        y_mid = y[:, 1 * WC:2 * WC]                                      # -> Y1[r]
        y_dn = pltpu.roll(y[:, 2 * WC:3 * WC], shift=TBH - 1, axis=0)   # -> Y2[r+1]
        return y_mid + y_up * top_keep + y_dn * bot_keep

    x = x_ref[...]                                      # (TBH, WC) f32

    # ---- conv1 + BN1 + ReLU (one bf16 cast of the aligned slab) -------------
    h = conv3x3(x.astype(bf16), w1_ref)
    h = jnp.maximum(h * s1_ref[...] + b1_ref[...], 0.0)

    # ---- conv2 + BN2 + residual + ReLU (intermediate stays on chip) ---------
    h = conv3x3(h.astype(bf16), w2_ref)
    h = h * s2_ref[...] + b2_ref[...] + x               # identity residual
    out_ref[...] = jnp.maximum(h, 0.0).astype(out_ref.dtype)


def _fold_bn(gamma, beta, mean, var, eps=1e-5):
    scale = gamma / jnp.sqrt(var + eps)
    bias = beta - mean * scale
    return scale, bias


def _banded_conv_weights(w_hwio, W):
    """(3, 3, Cin, Cout) -> (W*Cin, 3*W*Cout) banded weight slab.

    For each vertical tap dy, B[dy, wi*Cin + ci, wo*Cout + co] = w[dy, dx, ci, co]
    with wi = wo + dx - 1 when that tap offset is in range; zero otherwise (the
    band clipping at the matrix edges implements horizontal 'same' zero padding).
    The three dy matrices are concatenated along the output (N) axis so the
    kernel needs a single matmul per conv.
    """
    kh, kw, Cin, Cout = w_hwio.shape
    B = jnp.zeros((kh, W * Cin, W * Cout), w_hwio.dtype)
    for dx in range(kw):
        for wo in range(W):
            wi = wo + dx - 1
            if 0 <= wi < W:
                B = B.at[:, wi * Cin:(wi + 1) * Cin,
                         wo * Cout:(wo + 1) * Cout].set(w_hwio[:, dx])
    return jnp.concatenate([B[0], B[1], B[2]], axis=1)


def _pick_batch_tile(N, H, target_m=256):
    """Images per grid step: aim for M = TB*H ~ target_m, keep >=2 grid steps."""
    tb = max(1, min(N, target_m // H))
    while N % tb:
        tb -= 1
    while tb > 1 and N // tb < 2:
        tb -= 1
        while N % tb:
            tb -= 1
    return tb


def basic_block_forward(x_nhwc, params, *, tb=None):
    """x_nhwc: (N, H, W, C) float32.  Returns (N, H, W, C) float32."""
    N, H, W, C = x_nhwc.shape
    WC = W * C
    assert WC % 128 == 0, "lane-packed width W*C must be a multiple of 128"
    assert H % 8 == 0, "H must be a multiple of 8 (sublane alignment)"
    if tb is None:
        tb = _pick_batch_tile(N, H)
    assert N % tb == 0
    TBH = tb * H

    scale1, bias1 = _fold_bn(*params["bn1"])
    scale2, bias2 = _fold_bn(*params["bn2"])
    # Per-channel BN params tiled over W to match the (w, c) lane packing.
    s1 = jnp.tile(scale1, W).reshape(1, WC)
    b1 = jnp.tile(bias1, W).reshape(1, WC)
    s2 = jnp.tile(scale2, W).reshape(1, WC)
    b2 = jnp.tile(bias2, W).reshape(1, WC)

    w1cat = _banded_conv_weights(params["w1"], W).astype(jnp.bfloat16)
    w2cat = _banded_conv_weights(params["w2"], W).astype(jnp.bfloat16)

    # Free reshape (trailing dims collapse): lane-dense 2-D activation slab.
    x2d = x_nhwc.reshape(N * H, WC)

    kernel = functools.partial(_basic_block_kernel, H=H, WC=WC, TBH=TBH)

    flops = int(2 * 2 * N * H * WC * 3 * WC)            # 2 convs, M*K*N each
    bytes_accessed = int(2 * N * H * WC * 4             # x in + out
                         + 2 * WC * 3 * WC * 2          # bf16 banded weights
                         + 4 * WC * 4)                  # BN scales / biases

    # Honest VMEM budget: live window buffers (double-buffered) + temporaries.
    blk_bytes = TBH * WC * 4
    w_bytes = WC * 3 * WC * 2
    vmem_limit = int(2 * (2 * blk_bytes)        # x + out blocks, double buffered
                     + 2 * (2 * w_bytes)        # both weight slabs, double buffered
                     + 8 * 8 * WC * 4           # BN rows (sublane-padded), 2 bufs
                     + 4 * TBH * 3 * WC * 4     # matmul results / rotated copies
                     + (4 << 20))               # compiler temporaries headroom

    grid_spec = pltpu.PrefetchScalarGridSpec(
        num_scalar_prefetch=0,
        grid=(N // tb,),
        in_specs=[
            pl.BlockSpec((TBH, WC), lambda n: (n, 0)),        # x (TB images)
            pl.BlockSpec((WC, 3 * WC), lambda n: (0, 0)),     # conv1 banded weights
            pl.BlockSpec((1, WC), lambda n: (0, 0)),          # bn1 scale
            pl.BlockSpec((1, WC), lambda n: (0, 0)),          # bn1 bias
            pl.BlockSpec((WC, 3 * WC), lambda n: (0, 0)),     # conv2 banded weights
            pl.BlockSpec((1, WC), lambda n: (0, 0)),          # bn2 scale
            pl.BlockSpec((1, WC), lambda n: (0, 0)),          # bn2 bias
        ],
        out_specs=pl.BlockSpec((TBH, WC), lambda n: (n, 0)),
    )

    out2d = pl.pallas_call(
        kernel,
        out_shape=jax.ShapeDtypeStruct((N * H, WC), jnp.float32),
        grid_spec=grid_spec,
        compiler_params=pltpu.CompilerParams(
            dimension_semantics=("parallel",),
            vmem_limit_bytes=vmem_limit),
        cost_estimate=pl.CostEstimate(flops=flops, transcendentals=0,
                                      bytes_accessed=bytes_accessed),
    )(x2d, w1cat, s1, b1, w2cat, s2, b2)

    return out2d.reshape(N, H, W, C)


def _reference(x_nhwc, params):
    """Pure-JAX reference with the same precision choice (bf16 conv operands,
    f32 accumulation / epilogue) as the kernel."""
    def conv3x3(x, w):  # w: (3, 3, Cin, Cout)
        return jax.lax.conv_general_dilated(
            x.astype(jnp.bfloat16), w.astype(jnp.bfloat16),
            window_strides=(1, 1), padding=((1, 1), (1, 1)),
            dimension_numbers=("NHWC", "HWIO", "NHWC"),
            preferred_element_type=jnp.float32)

    def bn(x, p):
        gamma, beta, mean, var = p
        return (x - mean) / jnp.sqrt(var + 1e-5) * gamma + beta

    out = jax.nn.relu(bn(conv3x3(x_nhwc, params["w1"]), params["bn1"]))
    out = bn(conv3x3(out, params["w2"]), params["bn2"])
    return jax.nn.relu(out + x_nhwc)


if __name__ == "__main__":
    # Small shapes: batch=8 (so the kernel tiles TB=4 images per grid step with
    # 2 pipelined steps), channels=8, spatial=16 (inplanes == planes, stride=1),
    # chosen so the lane-packed width W*C == 128.
    N, C, H, W = 8, 8, 16, 16
    key = jax.random.PRNGKey(0)
    kx, kw1, kw2, kg1, kb1, kg2, kb2 = jax.random.split(key, 7)

    x_nchw = jax.random.normal(kx, (N, C, H, W), jnp.float32)   # PyTorch layout
    x_nhwc = jnp.transpose(x_nchw, (0, 2, 3, 1))                # kernel layout

    # conv3x3 weights: PyTorch (Cout, Cin, 3, 3) -> HWIO (3, 3, Cin, Cout)
    w1_pt = 0.1 * jax.random.normal(kw1, (C, C, 3, 3), jnp.float32)
    w2_pt = 0.1 * jax.random.normal(kw2, (C, C, 3, 3), jnp.float32)
    params = {
        "w1": jnp.transpose(w1_pt, (2, 3, 1, 0)),
        "w2": jnp.transpose(w2_pt, (2, 3, 1, 0)),
        # BatchNorm (inference): gamma, beta, running_mean, running_var
        "bn1": (1.0 + 0.1 * jax.random.normal(kg1, (C,), jnp.float32),
                0.1 * jax.random.normal(kb1, (C,), jnp.float32),
                0.05 * jnp.arange(C, dtype=jnp.float32),
                1.0 + 0.02 * jnp.arange(C, dtype=jnp.float32)),
        "bn2": (1.0 + 0.1 * jax.random.normal(kg2, (C,), jnp.float32),
                0.1 * jax.random.normal(kb2, (C,), jnp.float32),
                -0.03 * jnp.arange(C, dtype=jnp.float32),
                1.0 + 0.01 * jnp.arange(C, dtype=jnp.float32)),
    }

    fwd = jax.jit(basic_block_forward)
    out = fwd(x_nhwc, params)
    jax.block_until_ready(out)

    ref = _reference(x_nhwc, params)
    assert out.shape == (N, H, W, C)
    assert jnp.allclose(out, ref, atol=1e-2, rtol=1e-2), (
        "mismatch vs reference: max abs diff = %f"
        % float(jnp.max(jnp.abs(out - ref))))

    print("KERNEL_OK")
</pallas_src>

<mosaic_0001>
module attributes {stable_mosaic.version = 11 : i64} {
  func.func @_basic_block_kernel(%arg0: i32, %arg1: memref<64x128xf32, #tpu.memory_space<vmem>>, %arg2: memref<128x384xbf16, #tpu.memory_space<vmem>>, %arg3: memref<1x128xf32, #tpu.memory_space<vmem>>, %arg4: memref<1x128xf32, #tpu.memory_space<vmem>>, %arg5: memref<128x384xbf16, #tpu.memory_space<vmem>>, %arg6: memref<1x128xf32, #tpu.memory_space<vmem>>, %arg7: memref<1x128xf32, #tpu.memory_space<vmem>>, %arg8: memref<64x128xf32, #tpu.memory_space<vmem>>) attributes {dimension_semantics = [#tpu.dimension_semantics<parallel>], iteration_bounds = array<i64: 2>, scalar_prefetch = 0 : i64, scratch_operands = 0 : i64, tpu.core_type = #tpu.core_type<tc>, window_params = [{transform_indices = @transform_0, window_bounds = array<i64: 64, 128>}, {pipeline_mode = #tpu.pipeline_mode<synchronous>, transform_indices = @transform_1, window_bounds = array<i64: 128, 384>}, {pipeline_mode = #tpu.pipeline_mode<synchronous>, transform_indices = @transform_2, window_bounds = array<i64: 1, 128>}, {pipeline_mode = #tpu.pipeline_mode<synchronous>, transform_indices = @transform_3, window_bounds = array<i64: 1, 128>}, {pipeline_mode = #tpu.pipeline_mode<synchronous>, transform_indices = @transform_4, window_bounds = array<i64: 128, 384>}, {pipeline_mode = #tpu.pipeline_mode<synchronous>, transform_indices = @transform_5, window_bounds = array<i64: 1, 128>}, {pipeline_mode = #tpu.pipeline_mode<synchronous>, transform_indices = @transform_6, window_bounds = array<i64: 1, 128>}, {transform_indices = @transform_7, window_bounds = array<i64: 64, 128>}]} {
    %0 = tpu.iota {dimensions = array<i32: 0>} : vector<64x1xi32>
    %c16_i32 = arith.constant 16 : i32
    %c0_i32 = arith.constant 0 : i32
    %1 = arith.cmpi eq, %c16_i32, %c0_i32 : i32
    %c1_i32 = arith.constant 1 : i32
    %2 = arith.select %1, %c1_i32, %c16_i32 : i32
    %3 = vector.broadcast %2 : i32 to vector<64x1xi32>
    %4 = arith.remsi %0, %3 : vector<64x1xi32>
    %c0_i32_0 = arith.constant 0 : i32
    %5 = vector.broadcast %c0_i32_0 : i32 to vector<64x1xi32>
    %6 = arith.cmpi ne, %4, %5 : vector<64x1xi32>
    %c0_i32_1 = arith.constant 0 : i32
    %7 = vector.broadcast %c0_i32_1 : i32 to vector<64x1xi32>
    %8 = arith.cmpi slt, %4, %7 : vector<64x1xi32>
    %c0_i32_2 = arith.constant 0 : i32
    %9 = arith.cmpi slt, %2, %c0_i32_2 : i32
    %10 = vector.broadcast %9 : i1 to vector<64x1xi1>
    %11 = vector.broadcast %10 : vector<64x1xi1> to vector<64x1xi1>
    %12 = arith.xori %8, %11 : vector<64x1xi1>
    %13 = arith.andi %12, %6 : vector<64x1xi1>
    %14 = vector.broadcast %2 : i32 to vector<64x1xi32>
    %15 = arith.addi %4, %14 : vector<64x1xi32>
    %16 = arith.select %13, %15, %4 : vector<64x1xi1>, vector<64x1xi32>
    %c0_i32_3 = arith.constant 0 : i32
    %17 = vector.broadcast %c0_i32_3 : i32 to vector<64x1xi32>
    %18 = arith.cmpi ne, %16, %17 : vector<64x1xi32>
    %19 = arith.extui %18 : vector<64x1xi1> to vector<64x1xi32>
    %20 = arith.sitofp %19 : vector<64x1xi32> to vector<64x1xf32>
    %c15_i32 = arith.constant 15 : i32
    %21 = vector.broadcast %c15_i32 : i32 to vector<64x1xi32>
    %22 = arith.cmpi ne, %16, %21 : vector<64x1xi32>
    %23 = arith.extui %22 : vector<64x1xi1> to vector<64x1xi32>
    %24 = arith.sitofp %23 : vector<64x1xi32> to vector<64x1xf32>
    %c0 = arith.constant 0 : index
    %c0_4 = arith.constant 0 : index
    %25 = vector.load %arg1[%c0, %c0_4] : memref<64x128xf32, #tpu.memory_space<vmem>>, vector<64x128xf32>
    %26 = arith.truncf %25 : vector<64x128xf32> to vector<64x128xbf16>
    %c0_5 = arith.constant 0 : index
    %c0_6 = arith.constant 0 : index
    %27 = vector.load %arg2[%c0_5, %c0_6] : memref<128x384xbf16, #tpu.memory_space<vmem>>, vector<128x384xbf16>
    %cst = arith.constant dense<0.000000e+00> : vector<64x384xf32>
    %28 = tpu.matmul %26, %27, %cst {dimension_numbers = #tpu.dot_dimension_numbers<[1], [0], [0], [1], [0, 0, 1, 1], [], []>} : vector<64x128xbf16>, vector<128x384xbf16>, vector<64x384xf32> -> vector<64x384xf32>
    %29 = vector.extract_strided_slice %28 {offsets = [0, 0], sizes = [64, 128], strides = [1, 1]} : vector<64x384xf32> to vector<64x128xf32>
    %c1_i32_7 = arith.constant 1 : i32
    %30 = tpu.dynamic_rotate %29 by %c1_i32_7 dim 0 : vector<64x128xf32>, i32 -> vector<64x128xf32>
    %31 = vector.extract_strided_slice %28 {offsets = [0, 128], sizes = [64, 128], strides = [1, 1]} : vector<64x384xf32> to vector<64x128xf32>
    %32 = vector.extract_strided_slice %28 {offsets = [0, 256], sizes = [64, 128], strides = [1, 1]} : vector<64x384xf32> to vector<64x128xf32>
    %c63_i32 = arith.constant 63 : i32
    %33 = tpu.dynamic_rotate %32 by %c63_i32 dim 0 : vector<64x128xf32>, i32 -> vector<64x128xf32>
    %34 = vector.broadcast %20 : vector<64x1xf32> to vector<64x128xf32>
    %35 = arith.mulf %30, %34 : vector<64x128xf32>
    %36 = arith.addf %31, %35 : vector<64x128xf32>
    %37 = vector.broadcast %24 : vector<64x1xf32> to vector<64x128xf32>
    %38 = arith.mulf %33, %37 : vector<64x128xf32>
    %39 = arith.addf %36, %38 : vector<64x128xf32>
    %c0_8 = arith.constant 0 : index
    %c0_9 = arith.constant 0 : index
    %40 = vector.load %arg3[%c0_8, %c0_9] : memref<1x128xf32, #tpu.memory_space<vmem>>, vector<1x128xf32>
    %41 = vector.broadcast %40 : vector<1x128xf32> to vector<64x128xf32>
    %42 = arith.mulf %39, %41 : vector<64x128xf32>
    %c0_10 = arith.constant 0 : index
    %c0_11 = arith.constant 0 : index
    %43 = vector.load %arg4[%c0_10, %c0_11] : memref<1x128xf32, #tpu.memory_space<vmem>>, vector<1x128xf32>
    %44 = vector.broadcast %43 : vector<1x128xf32> to vector<64x128xf32>
    %45 = arith.addf %42, %44 : vector<64x128xf32>
    %cst_12 = arith.constant 0.000000e+00 : f32
    %46 = vector.broadcast %cst_12 : f32 to vector<64x128xf32>
    %47 = arith.maximumf %45, %46 : vector<64x128xf32>
    %48 = arith.truncf %47 : vector<64x128xf32> to vector<64x128xbf16>
    %c0_13 = arith.constant 0 : index
    %c0_14 = arith.constant 0 : index
    %49 = vector.load %arg5[%c0_13, %c0_14] : memref<128x384xbf16, #tpu.memory_space<vmem>>, vector<128x384xbf16>
    %cst_15 = arith.constant dense<0.000000e+00> : vector<64x384xf32>
    %50 = tpu.matmul %48, %49, %cst_15 {dimension_numbers = #tpu.dot_dimension_numbers<[1], [0], [0], [1], [0, 0, 1, 1], [], []>} : vector<64x128xbf16>, vector<128x384xbf16>, vector<64x384xf32> -> vector<64x384xf32>
    %51 = vector.extract_strided_slice %50 {offsets = [0, 0], sizes = [64, 128], strides = [1, 1]} : vector<64x384xf32> to vector<64x128xf32>
    %c1_i32_16 = arith.constant 1 : i32
    %52 = tpu.dynamic_rotate %51 by %c1_i32_16 dim 0 : vector<64x128xf32>, i32 -> vector<64x128xf32>
    %53 = vector.extract_strided_slice %50 {offsets = [0, 128], sizes = [64, 128], strides = [1, 1]} : vector<64x384xf32> to vector<64x128xf32>
    %54 = vector.extract_strided_slice %50 {offsets = [0, 256], sizes = [64, 128], strides = [1, 1]} : vector<64x384xf32> to vector<64x128xf32>
    %c63_i32_17 = arith.constant 63 : i32
    %55 = tpu.dynamic_rotate %54 by %c63_i32_17 dim 0 : vector<64x128xf32>, i32 -> vector<64x128xf32>
    %56 = vector.broadcast %20 : vector<64x1xf32> to vector<64x128xf32>
    %57 = arith.mulf %52, %56 : vector<64x128xf32>
    %58 = arith.addf %53, %57 : vector<64x128xf32>
    %59 = vector.broadcast %24 : vector<64x1xf32> to vector<64x128xf32>
    %60 = arith.mulf %55, %59 : vector<64x128xf32>
    %61 = arith.addf %58, %60 : vector<64x128xf32>
    %c0_18 = arith.constant 0 : index
    %c0_19 = arith.constant 0 : index
    %62 = vector.load %arg6[%c0_18, %c0_19] : memref<1x128xf32, #tpu.memory_space<vmem>>, vector<1x128xf32>
    %63 = vector.broadcast %62 : vector<1x128xf32> to vector<64x128xf32>
    %64 = arith.mulf %61, %63 : vector<64x128xf32>
    %c0_20 = arith.constant 0 : index
    %c0_21 = arith.constant 0 : index
    %65 = vector.load %arg7[%c0_20, %c0_21] : memref<1x128xf32, #tpu.memory_space<vmem>>, vector<1x128xf32>
    %66 = vector.broadcast %65 : vector<1x128xf32> to vector<64x128xf32>
    %67 = arith.addf %64, %66 : vector<64x128xf32>
    %68 = arith.addf %67, %25 : vector<64x128xf32>
    %cst_22 = arith.constant 0.000000e+00 : f32
    %69 = vector.broadcast %cst_22 : f32 to vector<64x128xf32>
    %70 = arith.maximumf %68, %69 : vector<64x128xf32>
    %c0_23 = arith.constant 0 : index
    %c0_24 = arith.constant 0 : index
    %71 = vector.load %arg8[%c0_23, %c0_24] : memref<64x128xf32, #tpu.memory_space<vmem>>, vector<64x128xf32>
    tpu.vector_store %arg8[%c0_23, %c0_24], %70 {strides = array<i32>} : memref<64x128xf32, #tpu.memory_space<vmem>>, vector<64x128xf32>,
    return
  }
  func.func @transform_0(%arg0: i32) -> (i32, i32) {
    %c0_i32 = arith.constant 0 : i32
    %c0_i32_0 = arith.constant 0 : i32
    return %arg0, %c0_i32 : i32, i32
  }
  func.func @transform_1(%arg0: i32) -> (i32, i32) {
    %c0_i32 = arith.constant 0 : i32
    %c0_i32_0 = arith.constant 0 : i32
    %c0_i32_1 = arith.constant 0 : i32
    return %c0_i32, %c0_i32_0 : i32, i32
  }
  func.func @transform_2(%arg0: i32) -> (i32, i32) {
    %c0_i32 = arith.constant 0 : i32
    %c0_i32_0 = arith.constant 0 : i32
    %c0_i32_1 = arith.constant 0 : i32
    return %c0_i32, %c0_i32_0 : i32, i32
  }
  func.func @transform_3(%arg0: i32) -> (i32, i32) {
    %c0_i32 = arith.constant 0 : i32
    %c0_i32_0 = arith.constant 0 : i32
    %c0_i32_1 = arith.constant 0 : i32
    return %c0_i32, %c0_i32_0 : i32, i32
  }
  func.func @transform_4(%arg0: i32) -> (i32, i32) {
    %c0_i32 = arith.constant 0 : i32
    %c0_i32_0 = arith.constant 0 : i32
    %c0_i32_1 = arith.constant 0 : i32
    return %c0_i32, %c0_i32_0 : i32, i32
  }
  func.func @transform_5(%arg0: i32) -> (i32, i32) {
    %c0_i32 = arith.constant 0 : i32
    %c0_i32_0 = arith.constant 0 : i32
    %c0_i32_1 = arith.constant 0 : i32
    return %c0_i32, %c0_i32_0 : i32, i32
  }
  func.func @transform_6(%arg0: i32) -> (i32, i32) {
    %c0_i32 = arith.constant 0 : i32
    %c0_i32_0 = arith.constant 0 : i32
    %c0_i32_1 = arith.constant 0 : i32
    return %c0_i32, %c0_i32_0 : i32, i32
  }
  func.func @transform_7(%arg0: i32) -> (i32, i32) {
    %c0_i32 = arith.constant 0 : i32
    %c0_i32_0 = arith.constant 0 : i32
    return %arg0, %c0_i32 : i32, i32
  }
}

</mosaic_0001>

<bundles_post_ra>
// kernel: tile.38
= control target key start
LH: loop header
LB: loop body
LE: loop exit
PB: predicated region body
PF: predicated region fallthrough
CT: control target
= control target key end

     0   :  { %s28_s0 = inlined_call_operand.vmem [shape: f32[8], index: 0, kind: input, shape index: {}]   ;;  %s29_s1 = inlined_call_operand.vmem [shape: f32[16,8], index: 1, kind: output, shape index: {}]  }
   0x1   :  { %v4_v0 = vld [vmem:[%s28_s0] ss:$0 sm:$0xff] }
   0x2   :  { %5 = vst [vmem:[%s29_s1] sm:$0xff] %v4_v0  ;;  %8 = vst [vmem:[%s29_s1 + $0x8] sm:$0xff] %v4_v0 }

// kernel: tile.39
= control target key start
LH: loop header
LB: loop body
LE: loop exit
PB: predicated region body
PF: predicated region fallthrough
CT: control target
= control target key end

     0   :  { %s131_s10 = smov 120   ;;  %s132_s11 = smov 104   ;;  %vm3_vm0 = vcmask 64512   ;;  %vm9_vm1 = vcmask 1048512   ;;  %vm15_vm2 = vcmask 982912   ;;  %vm21_vm3 = vcmask 917312   ;;  %s207_s0 = inlined_call_operand.vmem [shape: f32[16,8], index: 0, kind: input, shape index: {}]   ;;  %s208_s1 = inlined_call_operand.vmem [shape: f32[1,128], index: 1, kind: output, shape index: {}]  }
   0x1   :  { %v101_v0 = vld [vmem:[%s207_s0 + $0xf] sm:$0x1]   ;;  %v103_v1 = vld [vmem:[%s207_s0 + $0xd] sm:$0x1]   ;;  %v102_v2 = vld [vmem:[%s207_s0 + $0xe] sm:$0x1]  }
   0x2   :  { %7 = vrot.lane.b32.xlu0 %v101_v0, %s131_s10  ;;  %19 = vrot.lane.b32.xlu1 %v103_v1, %s132_s11  ;;  %v104_v3 = vld [vmem:[%s207_s0 + $0xc] sm:$0x1]   ;;  %s133_s16 = smov 112   ;;  %s134_s17 = smov 96   ;;  %v105_v4 = vld [vmem:[%s207_s0 + $0xb] sm:$0x1]  }
   0x3   :  { %v106_v5 = vld [vmem:[%s207_s0 + $0xa] sm:$0x1]   ;;  %v2_v6 = vld [vmem:[%s207_s0] sm:$0x1]   ;;  %s135_s24 = smov 88   ;;  %s136_s25 = smov 80  }
   0x4   :  { %4 = vst.msk [vmem:[#allocation0] sm:$0x1] %vm3_vm0, %v2_v6   ;;  %v107_v7 = vld [vmem:[%s207_s0 + $0x9] sm:$0x1]   ;;  %v108_v8 = vld [vmem:[%s207_s0 + $0x8] sm:$0x1]  }
   0x5   :  { %s137_s30 = smov 72   ;;  %s138_s2 = smov 64   ;;  %v109_v9 = vld [vmem:[%s207_s0 + $0x7] sm:$0x1]   ;;  %v110_v10 = vld [vmem:[%s207_s0 + $0x6] sm:$0x1]  }
   0x6   :  { %13 = vrot.lane.b32.xlu0 %v102_v2, %s133_s16  ;;  %25 = vrot.lane.b32.xlu1 %v104_v3, %s134_s17  ;;  %s139_s7 = smov 56   ;;  %s140_s8 = smov 48   ;;  %v111_v11 = vld [vmem:[%s207_s0 + $0x5] sm:$0x1]   ;;  %v112_v12 = vld [vmem:[%s207_s0 + $0x4] sm:$0x1]  }
   0x7   :  { %s141_s13 = smov 40   ;;  %s142_s14 = smov 32   ;;  %v113_v13 = vld [vmem:[%s207_s0 + $0x3] sm:$0x1]   ;;  %v114_v14 = vld [vmem:[%s207_s0 + $0x2] sm:$0x1]  }
   0x8   :  { %s143_s19 = smov 24   ;;  %s144_s20 = smov 16   ;;  %v115_v15 = vld [vmem:[%s207_s0 + $0x1] sm:$0x1]   ;;  %vm27_vm4 = vcmask 851712   ;;  %vm33_vm5 = vcmask 786112  }
   0x9   :  { %s145_s0 = smov 8   ;;  %vm39_vm6 = vcmask 720512   ;;  %vm45_vm7 = vcmask 654912   ;;  %vm51_vm8 = vcmask 589312   ;;  %vm57_vm9 = vcmask 523712  }
   0xa   :  { %31 = vrot.lane.b32.xlu0 %v105_v4, %s135_s24  ;;  %37 = vrot.lane.b32.xlu1 %v106_v5, %s136_s25  ;;  %vm63_vm10 = vcmask 458112   ;;  %vm69_vm11 = vcmask 392512   ;;  %vm75_vm12 = vcmask 326912   ;;  %vm81_vm13 = vcmask 261312  }
   0xb   :  { %vm87_vm14 = vcmask 195712   ;;  %vm93_vm15 = vcmask 130112  }
   0xe   :  { %43 = vrot.lane.b32.xlu0 %v107_v7, %s137_s30  ;;  %49 = vrot.lane.b32.xlu1 %v108_v8, %s138_s2 }
  0x12   :  { %55 = vrot.lane.b32.xlu0 %v109_v9, %s139_s7  ;;  %61 = vrot.lane.b32.xlu1 %v110_v10, %s140_s8 }
  0x16   :  { %67 = vrot.lane.b32.xlu0 %v111_v11, %s141_s13  ;;  %73 = vrot.lane.b32.xlu1 %v112_v12, %s142_s14 }
  0x1a   :  { %79 = vrot.lane.b32.xlu0 %v113_v13, %s143_s19  ;;  %85 = vrot.lane.b32.xlu1 %v114_v14, %s144_s20 }
  0x1e   :  { %91 = vrot.lane.b32.xlu0 %v115_v15, %s145_s0 }
  0x74   :  { %v8_v16 = vpop.permute.xlu0 %7   ;;  %v20_v17 = vpop.permute.xlu1 %19  }
  0x75   :  { %10 = vst.msk [vmem:[#allocation0] sm:$0x1] %vm9_vm1, %v8_v16  }
  0x78   :  { %v14_v18 = vpop.permute.xlu0 %13   ;;  %v26_v19 = vpop.permute.xlu1 %25  }
  0x79   :  { %16 = vst.msk [vmem:[#allocation0] sm:$0x1] %vm15_vm2, %v14_v18  }
  0x7a   :  { %22 = vst.msk [vmem:[#allocation0] sm:$0x1] %vm21_vm3, %v20_v17  }
  0x7b   :  { %28 = vst.msk [vmem:[#allocation0] sm:$0x1] %vm27_vm4, %v26_v19  }
  0x7c   :  { %v32_v20 = vpop.permute.xlu0 %31   ;;  %v38_v21 = vpop.permute.xlu1 %37  }
  0x7d   :  { %34 = vst.msk [vmem:[#allocation0] sm:$0x1] %vm33_vm5, %v32_v20  }
  0x7e   :  { %40 = vst.msk [vmem:[#allocation0] sm:$0x1] %vm39_vm6, %v38_v21  }
  0x80   :  { %v44_v22 = vpop.permute.xlu0 %43   ;;  %v50_v23 = vpop.permute.xlu1 %49  }
  0x81   :  { %46 = vst.msk [vmem:[#allocation0] sm:$0x1] %vm45_vm7, %v44_v22  }
  0x82   :  { %52 = vst.msk [vmem:[#allocation0] sm:$0x1] %vm51_vm8, %v50_v23  }
  0x84   :  { %v56_v24 = vpop.permute.xlu0 %55   ;;  %v62_v25 = vpop.permute.xlu1 %61  }
  0x85   :  { %58 = vst.msk [vmem:[#allocation0] sm:$0x1] %vm57_vm9, %v56_v24  }
  0x86   :  { %64 = vst.msk [vmem:[#allocation0] sm:$0x1] %vm63_vm10, %v62_v25  }
  0x88   :  { %v68_v26 = vpop.permute.xlu0 %67   ;;  %v74_v27 = vpop.permute.xlu1 %73  }
  0x89   :  { %70 = vst.msk [vmem:[#allocation0] sm:$0x1] %vm69_vm11, %v68_v26  }
  0x8a   :  { %76 = vst.msk [vmem:[#allocation0] sm:$0x1] %vm75_vm12, %v74_v27  }
  0x8c   :  { %v80_v28 = vpop.permute.xlu0 %79   ;;  %v86_v29 = vpop.permute.xlu1 %85  }
  0x8d   :  { %82 = vst.msk [vmem:[#allocation0] sm:$0x1] %vm81_vm13, %v80_v28  }
  0x8e   :  { %88 = vst.msk [vmem:[#allocation0] sm:$0x1] %vm87_vm14, %v86_v29  }
  0x90   :  { %v92_v30 = vpop.permute.xlu0 %91  }
  0x91   :  { %94 = vst.msk [vmem:[#allocation0] sm:$0x1] %vm93_vm15, %v92_v30  }
  0x98   :  { %v98_v31 = vld [vmem:[#allocation0] sm:$0x1] }
  0x99   :  { %100 = vst [vmem:[%s208_s1] sm:$0x1] %v98_v31 }

// kernel: basic_block_forward.1
= control target key start
LH: loop header
LB: loop body
LE: loop exit
PB: predicated region body
PF: predicated region fallthrough
CT: control target
= control target key end

     0   :  { %s1593_s24 = smov 0   ;;  %s2026_s0 = inlined_call_operand.vmem [shape: f32[128,128], index: 0, kind: input, shape index: {}]   ;;  %s2027_s1 = inlined_call_operand.vmem [shape: bf16[128,384], index: 1, kind: input, shape index: {}]   ;;  %s2028_s2 = inlined_call_operand.vmem [shape: f32[1,128], index: 2, kind: input, shape index: {}]   ;;  %s2029_s3 = inlined_call_operand.vmem [shape: f32[1,128], index: 3, kind: input, shape index: {}]   ;;  %s2030_s4 = inlined_call_operand.vmem [shape: bf16[128,384], index: 4, kind: input, shape index: {}]   ;;  %s2031_s5 = inlined_call_operand.vmem [shape: f32[1,128], index: 5, kind: input, shape index: {}]   ;;  %s2032_s6 = inlined_call_operand.vmem [shape: f32[1,128], index: 6, kind: input, shape index: {}]   ;;  %s2033_s7 = inlined_call_operand.vmem [shape: f32[128,128], index: 7, kind: output, shape index: {}]  }
   0x1 LB: > { %s1326_s25 = sadd.s32 4294967295, %s1549_s24   ;;  %p1330_p0 = scmp.ge.s32.totalorder %s1549_s24, 1  ;;  %s1549_s24 = sphi %s1593_s24, %s17_s24  }
   0x2   : > { %p238_p1 = scmp.lt.s32.totalorder %s1549_s24, 3 }
   0x4   : > { %p239_p2 = pnand %p1330_p0, %p238_p1 }
   0x5   : > { %v1479_v0 = vld [vmem:[%s2027_s1 + $0x4] ss:$12 sps:$4 sm:$0xff] (!%p239_p2)   ;;  %s1331_s28 = sshll.u32 (!%p239_p2), %s1326_s25, 3  ;;  %v1481_v1 = vld [vmem:[%s2027_s1 + $0x8] ss:$12 sps:$4 sm:$0xff] (!%p239_p2)   ;;  %v1551_v2 = vmov (!%p239_p2), 0   ;;  %v283_v61 = vlaneseq (!%p239_p2) }
   0x6   : > { %242 = sbr.rel (%p239_p2) target bundleno = 549 (0x225), region = 48  ;;  %640 = vmatprep.mubr.bf16.mxu0 (!%p239_p2), %v1551_v2  ;;  %608 = vmatprep.subr.bf16.mxu0 (!%p239_p2), %v1479_v0  ;;  %v1482_v3 = vld [vmem:[%s2027_s1] ss:$12 sps:$4 sm:$0xff] (!%p239_p2)   ;;  %p271_p3 = scmp.lt.s32.totalorder (!%p239_p2), %s1331_s28, 15  ;;  %v1483_v4 = vld [vmem:[%s2027_s1 + $0x1c] ss:$12 sps:$4 sm:$0xff] (!%p239_p2)  }
   0x7   : > { %1421 = vmatprep.subr.bf16.mxu1 (!%p239_p2), %v1481_v1  ;;  %609 = vmatpush1.bf16.msra.mxu0 (!%p239_p2), %v1482_v3  ;;  %v1485_v5 = vld [vmem:[%s2027_s1 + $0x20] ss:$12 sps:$4 sm:$0xff] (!%p239_p2)   ;;  %v1486_v6 = vld [vmem:[%s2027_s1 + $0x18] ss:$12 sps:$4 sm:$0xff] (!%p239_p2)   ;;  %v1490_v9 = vld [vmem:[%s2027_s1 + $0x30] ss:$12 sps:$4 sm:$0xff] (!%p239_p2)  }
   0x8   : > { %1422 = vmatpush3.bf16.msra.mxu1 (!%p239_p2), %v1481_v1  ;;  %610 = vmatprep.subr.bf16.mxu0 (!%p239_p2), %v1483_v4  ;;  %v1487_v7 = vld [vmem:[%s2027_s1 + $0x34] ss:$12 sps:$4 sm:$0xff] (!%p239_p2)   ;;  %v1489_v8 = vld [vmem:[%s2027_s1 + $0x38] ss:$12 sps:$4 sm:$0xff] (!%p239_p2)   ;;  %v1493_v11 = vld [vmem:[%s2027_s1 + $0x50] ss:$12 sps:$4 sm:$0xff] (!%p239_p2)  }
   0x9   : > { %1423 = vmatprep.subr.bf16.mxu1 (!%p239_p2), %v1485_v5  ;;  %v1491_v10 = vld [vmem:[%s2027_s1 + $0x4c] ss:$12 sps:$4 sm:$0xff] (!%p239_p2)   ;;  %v1494_v12 = vld [vmem:[%s2027_s1 + $0x48] ss:$12 sps:$4 sm:$0xff] (!%p239_p2)   ;;  %v1495_v13 = vld [vmem:[%s2027_s1 + $0x64] ss:$12 sps:$4 sm:$0xff] (!%p239_p2)  }
   0xa   : > { %v1497_v14 = vld [vmem:[%s2027_s1 + $0x68] ss:$12 sps:$4 sm:$0xff] (!%p239_p2)   ;;  %v1498_v15 = vld [vmem:[%s2027_s1 + $0x60] ss:$12 sps:$4 sm:$0xff] (!%p239_p2)   ;;  %v1502_v20 = vld [vmem:[%s2027_s1 + $0x78] ss:$12 sps:$4 sm:$0xff] (!%p239_p2)  }
   0xb   : > { %611 = vmatpush1.bf16.msra.mxu0 (!%p239_p2), %v1486_v6  ;;  %v1499_v16 = vld [vmem:[%s2027_s1 + $0x7c] ss:$12 sps:$4 sm:$0xff] (!%p239_p2)   ;;  %v1501_v17 = vld [vmem:[%s2027_s1 + $0x80] ss:$12 sps:$4 sm:$0xff] (!%p239_p2)   ;;  %v1505_v23 = vld [vmem:[%s2027_s1 + $0x98] ss:$12 sps:$4 sm:$0xff] (!%p239_p2)  }
   0xc   : > { %1424 = vmatpush3.bf16.msra.mxu1 (!%p239_p2), %v1485_v5  ;;  %612 = vmatprep.subr.bf16.mxu0 (!%p239_p2), %v1487_v7  ;;  %v1503_v21 = vld [vmem:[%s2027_s1 + $0x94] ss:$12 sps:$4 sm:$0xff] (!%p239_p2)   ;;  %v1506_v24 = vld [vmem:[%s2027_s1 + $0x90] ss:$12 sps:$4 sm:$0xff] (!%p239_p2)   ;;  %v1507_v25 = vld [vmem:[%s2027_s1 + $0xac] ss:$12 sps:$4 sm:$0xff] (!%p239_p2)  }
   0xd   : > { %s2041_s28 = smov (!%p271_p3, %s1331_s28), 15  ;;  %1425 = vmatprep.subr.bf16.mxu1 %v1489_v8  ;;  %v1509_v26 = vld [vmem:[%s2027_s1 + $0xb0] ss:$12 sps:$4 sm:$0xff]   ;;  %v1510_v27 = vld [vmem:[%s2027_s1 + $0xa8] ss:$12 sps:$4 sm:$0xff]   ;;  %v1792_v62 = vshrl.u32 %v283_v61, 7 }
   0xe   : > { %s1332_s30 = sshll.u32 %s2041_s28, 3  ;;  %v1513_v37 = vld [vmem:[%s2030_s4 + $0x4] ss:$12 sps:$4 sm:$0xff]   ;;  %v1511_v38 = vld [vmem:[%s2030_s4] ss:$12 sps:$4 sm:$0xff]  }
   0xf   : > { %613 = vmatpush1.bf16.msra.mxu0 %v1490_v9  ;;  %s1655_s16 = scalar_lea.vmem %s2026_s0, %s1332_s30  ;;  %v1514_v39 = vld [vmem:[%s2030_s4 + $0x8] ss:$12 sps:$4 sm:$0xff]   ;;  %v1515_v41 = vld [vmem:[%s2030_s4 + $0x18] ss:$12 sps:$4 sm:$0xff]   ;;  %v1518_v42 = vld [vmem:[%s2030_s4 + $0x20] ss:$12 sps:$4 sm:$0xff]   ;;  %s1973_s13 = scalar_lea.vmem %s2033_s7, %s1332_s30 }
  0x10   : > { %1426 = vmatpush3.bf16.msra.mxu1 %v1489_v8  ;;  %614 = vmatprep.subr.bf16.mxu0 %v1491_v10  ;;  %v1664_v18 = vld [vmem:[%s1655_s16] sm:$0xff]  ;;  %v1667_v19 = vld [vmem:[%s1655_s16 + $0x8] sm:$0xff]  ;;  %v1693_v28 = vld [vmem:[%s1655_s16 + $0x10] sm:$0xff]  ;;  %v285_v63 = vadd.s32 8, %v1792_v62  ;;  %v286_v1 = vadd.s32 16, %v1792_v62  ;;  %v287_v3 = vadd.s32 24, %v1792_v62 }
  0x11   : > { %1427 = vmatprep.subr.bf16.mxu1 %v1493_v11  ;;  %v444_v22 = vpack.c.bf16 %v1667_v19, %v1664_v18  ;;  %v1696_v29 = vld [vmem:[%s1655_s16 + $0x18] sm:$0xff]  ;;  %v1699_v30 = vld [vmem:[%s1655_s16 + $0x20] sm:$0xff]  ;;  %v1702_v31 = vld [vmem:[%s1655_s16 + $0x28] sm:$0xff]  ;;  %vm754_vm0 = vcmp.lt.s32.totalorder %v1792_v62, 1  ;;  %vm771_vm2 = vcmp.lt.s32.totalorder %v1792_v62, 7 }
  0x12   : > { %v445_v32 = vpack.c.bf16 %v1696_v29, %v1693_v28  ;;  %v446_v33 = vpack.c.bf16 %v1702_v31, %v1699_v30  ;;  %v1710_v34 = vld [vmem:[%s1655_s16 + $0x30] sm:$0xff]  ;;  %v1713_v35 = vld [vmem:[%s1655_s16 + $0x38] sm:$0xff]  ;;  %v1527_v50 = vld [vmem:[%s2030_s4 + $0x60] ss:$12 sps:$4 sm:$0xff]   ;;  %v303_v0 = vand.u32 15, %v285_v63  ;;  %v310_v9 = vand.u32 15, %v286_v1 }
  0x13   : > { %615 = vmatpush1.bf16.msra.mxu0 %v1494_v12  ;;  %1437 = vmatprep.mubr.bf16.mxu1 %v444_v22  ;;  %v447_v36 = vpack.c.bf16 %v1713_v35, %v1710_v34  ;;  %v1517_v40 = vld [vmem:[%s2030_s4 + $0x1c] ss:$12 sps:$4 sm:$0xff]   ;;  %v1521_v43 = vld [vmem:[%s2030_s4 + $0x34] ss:$12 sps:$4 sm:$0xff]   ;;  %v1522_v45 = vld [vmem:[%s2030_s4 + $0x38] ss:$12 sps:$4 sm:$0xff]  }
  0x14   : > { %1428 = vmatpush3.bf16.msra.mxu1 %v1493_v11  ;;  %616 = vmatprep.subr.bf16.mxu0 %v1495_v13  ;;  %v1519_v44 = vld [vmem:[%s2030_s4 + $0x30] ss:$12 sps:$4 sm:$0xff]   ;;  %v1525_v46 = vld [vmem:[%s2030_s4 + $0x4c] ss:$12 sps:$4 sm:$0xff]   ;;  %v1523_v47 = vld [vmem:[%s2030_s4 + $0x48] ss:$12 sps:$4 sm:$0xff]  }
  0x15   : > { %1429 = vmatprep.subr.bf16.mxu1 %v1497_v14  ;;  %v1526_v48 = vld [vmem:[%s2030_s4 + $0x50] ss:$12 sps:$4 sm:$0xff]   ;;  %v1530_v51 = vld [vmem:[%s2030_s4 + $0x68] ss:$12 sps:$4 sm:$0xff]   ;;  %v1531_v53 = vld [vmem:[%s2030_s4 + $0x78] ss:$12 sps:$4 sm:$0xff]  }
  0x16   : > { %v1529_v49 = vld [vmem:[%s2030_s4 + $0x64] ss:$12 sps:$4 sm:$0xff]   ;;  %v1533_v52 = vld [vmem:[%s2030_s4 + $0x7c] ss:$12 sps:$4 sm:$0xff]   ;;  %v1534_v54 = vld [vmem:[%s2030_s4 + $0x80] ss:$12 sps:$4 sm:$0xff]  }
  0x17   : > { %617 = vmatpush1.bf16.msra.mxu0 %v1498_v15  ;;  %v1537_v55 = vld [vmem:[%s2030_s4 + $0x94] ss:$12 sps:$4 sm:$0xff]   ;;  %v1535_v56 = vld [vmem:[%s2030_s4 + $0x90] ss:$12 sps:$4 sm:$0xff]   ;;  %v1538_v57 = vld [vmem:[%s2030_s4 + $0x98] ss:$12 sps:$4 sm:$0xff]  }
  0x18   : > { %1430 = vmatpush3.bf16.msra.mxu1 %v1497_v14  ;;  %618 = vmatprep.subr.bf16.mxu0 %v1499_v16  ;;  %v1539_v58 = vld [vmem:[%s2030_s4 + $0xa8] ss:$12 sps:$4 sm:$0xff]   ;;  %v1541_v59 = vld [vmem:[%s2030_s4 + $0xac] ss:$12 sps:$4 sm:$0xff]   ;;  %v1542_v60 = vld [vmem:[%s2030_s4 + $0xb0] ss:$12 sps:$4 sm:$0xff]  }
  0x19   : > { %1431 = vmatprep.subr.bf16.mxu1 %v1501_v17  ;;  %vm1802_vm1 = vcmp.ne.s32.totalorder %v303_v0, 15  ;;  %v317_v14 = vand.u32 15, %v287_v3  ;;  %v288_v15 = vadd.s32 32, %v1792_v62  ;;  %vm390_vm3 = vcmp.ne.s32.totalorder %v310_v9, 0 }
  0x1a   : > { %v290_v0 = vadd.s32 48, %v1792_v62 }
  0x1b   : > { %619 = vmatpush1.bf16.msra.mxu0 %v1502_v20  ;;  %vm415_vm4 = vcmp.ne.s32.totalorder %v317_v14, 15  ;;  %v1865_v14 = vld [vmem:[%s2028_s2] ss:$0 sm:$0xff] }
  0x1c   : > { %1432 = vmatpush3.bf16.msra.mxu1 %v1501_v17  ;;  %620 = vmatprep.subr.bf16.mxu0 %v1503_v21 }
  0x1d   : > { %1433 = vmatprep.subr.bf16.mxu1 %v1505_v23 }
  0x1f   : > { %621 = vmatpush1.bf16.msra.mxu0 %v1506_v24  ;;  %v1552_v24 = vmov 0.0  }
  0x20   : > { %1434 = vmatpush3.bf16.msra.mxu1 %v1505_v23  ;;  %622 = vmatprep.subr.bf16.mxu0 %v1507_v25  ;;  %v289_v23 = vadd.s32 40, %v1792_v62  ;;  %v1813_v25 = vsel %vm1802_vm1, 1.0, %v1552_v24 }
  0x21   : > { %1435 = vmatprep.subr.bf16.mxu1 %v1509_v26 }
  0x23   : > { %623 = vmatpush1.bf16.msra.mxu0 %v1510_v27 }
  0x24   : > { %1436 = vmatpush3.bf16.msra.mxu1 %v1509_v26  ;;  %1014 = vmatprep.subr.bf16.mxu0 %v1513_v37 }
  0x25   : > { %1445 = vmatprep.subr.bf16.mxu1 %v1514_v39 }
  0x26   : > { %641 = vmatmul.mubr.bf16.vlgmr.msra.gmra.mrb[0].mxu0 %v444_v22 }
  0x27   : > { %1438 = vmatmul.mubr.bf16.vlgmr.msra.gmra.mrb[0].mxu1 %v445_v32  ;;  %650 = vmatprep.mubr.bf16.mxu0 %v1551_v2 }
  0x28   : > { %1441 = vmatprep.mubr.bf16.mxu1 %v446_v33  ;;  %1015 = vmatpush1.bf16.msra.mxu0 %v1511_v38  ;;  %v324_v38 = vand.u32 15, %v288_v15 }
  0x29   : > { %1446 = vmatpush3.bf16.msra.mxu1 %v1514_v39  ;;  %1016 = vmatprep.subr.bf16.mxu0 %v1517_v40  ;;  %v331_v40 = vand.u32 15, %v289_v23 }
  0x2a   : > { %1447 = vmatprep.subr.bf16.mxu1 %v1518_v42  ;;  %vm1836_vm5 = vcmp.ne.s32.totalorder %v324_v38, 0  ;;  %v1368_v38 = vld [vmem:[%s2029_s3] ss:$0 sm:$0xff] }
  0x2b   : > { %vm1842_vm6 = vcmp.ne.s32.totalorder %v331_v40, 15 }
  0x2c   : > { %1017 = vmatpush1.bf16.msra.mxu0 %v1515_v41  ;;  %v1875_v23 = vsel %vm1842_vm6, 1.0, %v1552_v24 }
  0x2d   : > { %1448 = vmatpush3.bf16.msra.mxu1 %v1518_v42  ;;  %1018 = vmatprep.subr.bf16.mxu0 %v1521_v43 }
  0x2e   : > { %651 = vmatmul.mubr.bf16.gmra.mrb[4].mxu0 %v445_v32  ;;  %1449 = vmatprep.subr.bf16.mxu1 %v1522_v45 }
  0x2f   : > { %1442 = vmatmul.mubr.bf16.gmra.mrb[4].mxu1 %v447_v36  ;;  %660 = vmatprep.mubr.bf16.mxu0 %v1551_v2 }
  0x30   : > { %1019 = vmatpush1.bf16.msra.mxu0 %v1519_v44 }
  0x31   : > { %1450 = vmatpush3.bf16.msra.mxu1 %v1522_v45  ;;  %1020 = vmatprep.subr.bf16.mxu0 %v1525_v46  ;;  %v1831_v45 = vsel %vm390_vm3, 1.0, %v1552_v24 }
  0x32   : > { %1451 = vmatprep.subr.bf16.mxu1 %v1526_v48 }
  0x34   : > { %1021 = vmatpush1.bf16.msra.mxu0 %v1523_v47 }
  0x35   : > { %1452 = vmatpush3.bf16.msra.mxu1 %v1526_v48  ;;  %1022 = vmatprep.subr.bf16.mxu0 %v1529_v49 }
  0x36   : > { %661 = vmatmul.mubr.bf16.gmra.mrb[8].mxu0 %v446_v33  ;;  %1453 = vmatprep.subr.bf16.mxu1 %v1530_v51 }
  0x37   : > { %670 = vmatprep.mubr.bf16.mxu0 %v1551_v2 }
  0x38   : > { %1023 = vmatpush1.bf16.msra.mxu0 %v1527_v50 }
  0x39   : > { %1454 = vmatpush3.bf16.msra.mxu1 %v1530_v51  ;;  %1024 = vmatprep.subr.bf16.mxu0 %v1533_v52  ;;  %v1834_v51 = vsel %vm415_vm4, 1.0, %v1552_v24 }
  0x3a   : > { %1455 = vmatprep.subr.bf16.mxu1 %v1534_v54 }
  0x3c   : > { %1025 = vmatpush1.bf16.msra.mxu0 %v1531_v53 }
  0x3d   : > { %1456 = vmatpush3.bf16.msra.mxu1 %v1534_v54  ;;  %1026 = vmatprep.subr.bf16.mxu0 %v1537_v55 }
  0x3e   : > { %671 = vmatmul.mubr.bf16.gmra.mrb[12].mxu0 %v447_v36  ;;  %1457 = vmatprep.subr.bf16.mxu1 %v1538_v57 }
  0x3f   : > { %1046 = vmatprep.mubr.bf16.mxu0 %v1551_v2 }
  0x40   : > { %1027 = vmatpush1.bf16.msra.mxu0 %v1535_v56 }
  0x41   : > { %1458 = vmatpush3.bf16.msra.mxu1 %v1538_v57  ;;  %1028 = vmatprep.subr.bf16.mxu0 %v1541_v59 }
  0x42   : > { %1459 = vmatprep.subr.bf16.mxu1 %v1542_v60 }
  0x44   : > { %1029 = vmatpush1.bf16.msra.mxu0 %v1539_v58 }
  0x45   : > { %1460 = vmatpush3.bf16.msra.mxu1 %v1542_v60 }
  0xf9   : > { %v1797_v4 = vpop.f32.mrb[0].mxu0 }
  0xfa   : > { %v1439_v5 = vpop.f32.mrb[0].mxu1  ;;  %v1800_v6 = vpop.f32.mrb[1].mxu0  ;;  %v746_v16 = vrot.slane %v1797_v4, 7 }
  0xfb   : > { %v715_v7 = vpop.f32.mrb[1].mxu1  ;;  %v765_v10 = vrot.slane %v1439_v5, 1  ;;  %v646_v12 = vpop.f32.mrb[2].mxu0 }
  0xfc   : > { %v763_v11 = vrot.slane %v715_v7, 1  ;;  %v1440_v13 = vpop.f32.mrb[2].mxu1  ;;  %v747_v17 = vrot.slane %v646_v12, 7  ;;  %v648_v21 = vpop.f32.mrb[3].mxu0  ;;  %v291_v7 = vadd.s32 56, %v1792_v62 }
  0xfd   : > { %v766_v20 = vrot.slane %v1440_v13, 1  ;;  %v718_v22 = vpop.f32.mrb[3].mxu1 }
  0xfe   : > { %v764_v26 = vrot.slane %v718_v22, 1  ;;  %v761_v27 = vsel %vm754_vm0, %v746_v16, %v747_v17 }
  0xff   : > { %v776_v32 = vsel %vm771_vm2, %v765_v10, %v766_v20  ;;  %v789_v33 = vadd.f32 %v761_v27, %v648_v21  ;;  %v345_v27 = vand.u32 15, %v291_v7 }
 0x100   : > { %v777_v36 = vsel %vm771_vm2, %v764_v26, %v765_v10  ;;  %v1825_v37 = vsel %vm771_vm2, %v763_v11, %v764_v26  ;;  %v338_v26 = vand.u32 15, %v290_v0 }
 0x101   : > { %v797_v39 = vmul.f32 %v1813_v25, %v777_v36  ;;  %v652_v41 = vpop.f32.mrb[4].mxu0  ;;  %vm419_vm8 = vcmp.ne.s32.totalorder %v345_v27, 15 }
 0x102   : > { %v1443_v42 = vpop.f32.mrb[4].mxu1  ;;  %v748_v44 = vrot.slane %v652_v41, 7  ;;  %v654_v46 = vpop.f32.mrb[5].mxu0  ;;  %vm394_vm7 = vcmp.ne.s32.totalorder %v338_v26, 0 }
 0x103   : > { %v1828_v43 = vadd.f32 %v797_v39, %v789_v33  ;;  %v731_v47 = vpop.f32.mrb[5].mxu1  ;;  %v769_v48 = vrot.slane %v1443_v42, 1  ;;  %v656_v49 = vpop.f32.mrb[6].mxu0  ;;  %v296_v42 = vand.u32 15, %v1792_v62 }
 0x104   : > { %v767_v50 = vrot.slane %v731_v47, 1  ;;  %v1444_v53 = vpop.f32.mrb[6].mxu1  ;;  %v760_v54 = vsel %vm754_vm0, %v747_v17, %v748_v44  ;;  %v749_v55 = vrot.slane %v656_v49, 7  ;;  %v658_v56 = vpop.f32.mrb[7].mxu0 }
 0x105   : > { %v770_v57 = vrot.slane %v1444_v53, 1  ;;  %v734_v58 = vpop.f32.mrb[7].mxu1  ;;  %v782_v60 = vmul.f32 %v1831_v45, %v760_v54  ;;  %vm388_vm9 = vcmp.ne.s32.totalorder %v296_v42, 0 }
 0x106   : > { %v775_v61 = vsel %vm771_vm2, %v766_v20, %v767_v50  ;;  %v768_v63 = vrot.slane %v734_v58, 1  ;;  %v759_v1 = vsel %vm754_vm0, %v748_v44, %v749_v55  ;;  %v1870_v20 = vsel %vm1836_vm5, 1.0, %v1552_v24 }
 0x107   : > { %v799_v3 = vmul.f32 %v1834_v51, %v775_v61  ;;  %v779_v5 = vsel %vm771_vm2, %v770_v57, %v763_v11  ;;  %v790_v8 = vadd.f32 %v782_v60, %v654_v46  ;;  %v791_v9 = vadd.f32 %v759_v1, %v658_v56 }
 0x108   : > { %v773_v10 = vsel %vm771_vm2, %v768_v63, %v769_v48  ;;  %v774_v12 = vsel %vm771_vm2, %v767_v50, %v768_v63  ;;  %v772_v13 = vsel %vm771_vm2, %v769_v48, %v770_v57  ;;  %v1890_v60 = vsel %vm394_vm7, 1.0, %v1552_v24 }
 0x109   : > { %v806_v15 = vadd.f32 %v790_v8, %v776_v32  ;;  %v807_v11 = vadd.f32 %v799_v3, %v791_v9  ;;  %v662_v17 = vpop.f32.mrb[8].mxu0  ;;  %v801_v48 = vmul.f32 %v1875_v23, %v773_v10  ;;  %v1893_v63 = vsel %vm419_vm8, 1.0, %v1552_v24 }
 0x10a   : > { %v750_v21 = vrot.slane %v662_v17, 7  ;;  %v664_v22 = vpop.f32.mrb[9].mxu0  ;;  %v1900_v8 = vsel %vm388_vm9, 1.0, %v1552_v24 }
 0x10b   : > { %v821_v33 = vmul.f32 %v1865_v14, %v806_v15  ;;  %v822_v32 = vmul.f32 %v1865_v14, %v807_v11  ;;  %v666_v36 = vpop.f32.mrb[10].mxu0  ;;  %v803_v15 = vmul.f32 %v1893_v63, %v779_v5 }
 0x10c   : > { %v758_v39 = vsel %vm754_vm0, %v749_v55, %v750_v21  ;;  %v751_v40 = vrot.slane %v666_v36, 7  ;;  %v668_v41 = vpop.f32.mrb[11].mxu0  ;;  %v820_v36 = vmul.f32 %v1865_v14, %v1828_v43 }
 0x10d   : > { %v836_v44 = vadd.f32 %v1368_v38, %v821_v33  ;;  %v837_v46 = vadd.f32 %v1368_v38, %v822_v32  ;;  %v784_v47 = vmul.f32 %v1870_v20, %v758_v39 }
 0x10e   : > { %v757_v49 = vsel %vm754_vm0, %v750_v21, %v751_v40 }
 0x10f   : > { %v844_v50 = vmax.f32 %v836_v44, 0.0  ;;  %v845_v52 = vmax.f32 %v837_v46, 0.0  ;;  %v792_v53 = vadd.f32 %v784_v47, %v664_v22  ;;  %v793_v54 = vadd.f32 %v757_v49, %v668_v41 }
 0x110   : > { %v835_v44 = vadd.f32 %v1368_v38, %v820_v36  ;;  %v1947_v36 = vld [vmem:[%s2032_s6] ss:$0 sm:$0xff] }
 0x111   : > { %v851_v55 = vpack.c.bf16 %v845_v52, %v844_v50  ;;  %v808_v56 = vadd.f32 %v792_v53, %v774_v12  ;;  %v809_v57 = vadd.f32 %v801_v48, %v793_v54  ;;  %v672_v58 = vpop.f32.mrb[12].mxu0 }
 0x112   : > { %v752_v59 = vrot.slane %v672_v58, 7  ;;  %v674_v61 = vpop.f32.mrb[13].mxu0  ;;  %v843_v43 = vmax.f32 %v835_v44, 0.0 }
 0x113   : > { %v823_v0 = vmul.f32 %v1865_v14, %v808_v56  ;;  %v824_v1 = vmul.f32 %v1865_v14, %v809_v57  ;;  %v676_v3 = vpop.f32.mrb[14].mxu0 }
 0x114   : > { %v756_v7 = vsel %vm754_vm0, %v751_v40, %v752_v59  ;;  %v753_v9 = vrot.slane %v676_v3, 7  ;;  %v678_v10 = vpop.f32.mrb[15].mxu0 }
 0x115   : > { %v786_v12 = vmul.f32 %v1890_v60, %v756_v7  ;;  %v838_v11 = vadd.f32 %v1368_v38, %v823_v0  ;;  %v839_v17 = vadd.f32 %v1368_v38, %v824_v1 }
 0x116   : > { %v762_v21 = vsel %vm754_vm0, %v753_v9, %v746_v16  ;;  %v755_v22 = vsel %vm754_vm0, %v752_v59, %v753_v9 }
 0x117   : > { %v794_v26 = vadd.f32 %v786_v12, %v674_v61  ;;  %v780_v24 = vmul.f32 %v1900_v8, %v762_v21  ;;  %v795_v27 = vadd.f32 %v755_v22, %v678_v10  ;;  %v846_v33 = vmax.f32 %v838_v11, 0.0  ;;  %v1942_v21 = vld [vmem:[%s2031_s5] ss:$0 sm:$0xff] }
 0x118   : > { %v847_v32 = vmax.f32 %v839_v17, 0.0 }
 0x119   : > { %v810_v5 = vadd.f32 %v794_v26, %v772_v13  ;;  %v788_v39 = vadd.f32 %v780_v24, %v1800_v6  ;;  %v811_v40 = vadd.f32 %v803_v15, %v795_v27 }
 0x11a   : > { %v852_v4 = vpack.c.bf16 %v847_v32, %v846_v33 }
 0x11b   : > { %v825_v41 = vmul.f32 %v1865_v14, %v810_v5  ;;  %v804_v16 = vadd.f32 %v788_v39, %v1825_v37  ;;  %v826_v42 = vmul.f32 %v1865_v14, %v811_v40 }
 0x11d   : > { %v819_v46 = vmul.f32 %v1865_v14, %v804_v16  ;;  %v840_v47 = vadd.f32 %v1368_v38, %v825_v41  ;;  %v841_v48 = vadd.f32 %v1368_v38, %v826_v42 }
 0x11f   : > { %v834_v49 = vadd.f32 %v1368_v38, %v819_v46  ;;  %v848_v50 = vmax.f32 %v840_v47, 0.0  ;;  %v849_v52 = vmax.f32 %v841_v48, 0.0 }
 0x121   : > { %v842_v13 = vmax.f32 %v834_v49, 0.0  ;;  %v853_v53 = vpack.c.bf16 %v849_v52, %v848_v50 }
 0x123   : > { %v850_v6 = vpack.c.bf16 %v843_v43, %v842_v13 }
 0x125   : > { %1047 = vmatmul.mubr.bf16.vlgmr.msra.gmra.mrb[16].mxu0 %v850_v6  ;;  %1461 = vmatprep.mubr.bf16.mxu1 %v850_v6 }
 0x126   : > { %1462 = vmatmul.mubr.bf16.vlgmr.msra.gmra.mrb[8].mxu1 %v851_v55  ;;  %1056 = vmatprep.mubr.bf16.mxu0 %v1551_v2 }
 0x127   : > { %1465 = vmatprep.mubr.bf16.mxu1 %v852_v4 }
 0x12d   : > { %1057 = vmatmul.mubr.bf16.gmra.mrb[20].mxu0 %v851_v55 }
 0x12e   : > { %1466 = vmatmul.mubr.bf16.gmra.mrb[12].mxu1 %v853_v53  ;;  %1066 = vmatprep.mubr.bf16.mxu0 %v1551_v2 }
 0x135   : > { %1067 = vmatmul.mubr.bf16.gmra.mrb[24].mxu0 %v852_v4 }
 0x136   : > { %1076 = vmatprep.mubr.bf16.mxu0 %v1551_v2 }
 0x13d   : > { %1077 = vmatmul.mubr.bf16.gmra.mrb[28].mxu0 %v853_v53 }
 0x1f8   : > { %v1921_v37 = vpop.f32.mrb[16].mxu0 }
 0x1f9   : > { %v1923_v14 = vpop.f32.mrb[17].mxu0  ;;  %v1463_v38 = vpop.f32.mrb[8].mxu1  ;;  %v1152_v57 = vrot.slane %v1921_v37, 7 }
 0x1fa   : > { %v1052_v54 = vpop.f32.mrb[18].mxu0  ;;  %v1121_v56 = vpop.f32.mrb[9].mxu1  ;;  %v1170_v55 = vrot.slane %v1463_v38, 1 }
 0x1fb   : > { %v1153_v58 = vrot.slane %v1052_v54, 7  ;;  %v1054_v59 = vpop.f32.mrb[19].mxu0  ;;  %v1464_v61 = vpop.f32.mrb[10].mxu1  ;;  %v1168_v3 = vrot.slane %v1121_v56, 1 }
 0x1fc   : > { %v1171_v0 = vrot.slane %v1464_v61, 1  ;;  %v1124_v1 = vpop.f32.mrb[11].mxu1 }
 0x1fd   : > { %v1166_v2 = vsel %vm754_vm0, %v1152_v57, %v1153_v58  ;;  %v1169_v7 = vrot.slane %v1124_v1, 1 }
 0x1fe   : > { %v1193_v9 = vadd.f32 %v1166_v2, %v1054_v59  ;;  %v1180_v10 = vsel %vm771_vm2, %v1170_v55, %v1171_v0 }
 0x1ff   : > { %v1181_v12 = vsel %vm771_vm2, %v1169_v7, %v1170_v55  ;;  %v1936_v15 = vsel %vm771_vm2, %v1168_v3, %v1169_v7 }
 0x200   : > { %v1201_v11 = vmul.f32 %v1813_v25, %v1181_v12  ;;  %v1058_v17 = vpop.f32.mrb[20].mxu0 }
 0x201   : > { %v1154_v22 = vrot.slane %v1058_v17, 7  ;;  %v1060_v26 = vpop.f32.mrb[21].mxu0  ;;  %v1467_v24 = vpop.f32.mrb[12].mxu1 }
 0x202   : > { %v1209_v27 = vadd.f32 %v1201_v11, %v1193_v9  ;;  %v1062_v33 = vpop.f32.mrb[22].mxu0  ;;  %v1137_v32 = vpop.f32.mrb[13].mxu1  ;;  %v1174_v46 = vrot.slane %v1467_v24, 1 }
 0x203   : > { %v1165_v25 = vsel %vm754_vm0, %v1153_v58, %v1154_v22  ;;  %v1155_v5 = vrot.slane %v1062_v33, 7  ;;  %v1172_v39 = vrot.slane %v1137_v32, 1  ;;  %v1064_v40 = vpop.f32.mrb[23].mxu0  ;;  %v1468_v4 = vpop.f32.mrb[14].mxu1 }
 0x204   : > { %v1224_v41 = vmul.f32 %v1942_v21, %v1209_v27  ;;  %v1186_v16 = vmul.f32 %v1831_v45, %v1165_v25  ;;  %v1175_v42 = vrot.slane %v1468_v4, 1  ;;  %v1140_v44 = vpop.f32.mrb[15].mxu1 }
 0x205   : > { %v1179_v47 = vsel %vm771_vm2, %v1171_v0, %v1172_v39  ;;  %v1164_v48 = vsel %vm754_vm0, %v1154_v22, %v1155_v5  ;;  %v1173_v49 = vrot.slane %v1140_v44, 1 }
 0x206   : > { %v1239_v50 = vadd.f32 %v1947_v36, %v1224_v41  ;;  %v1194_v52 = vadd.f32 %v1186_v16, %v1060_v26  ;;  %v1195_v43 = vadd.f32 %v1164_v48, %v1064_v40  ;;  %v1203_v13 = vmul.f32 %v1834_v51, %v1179_v47 }
 0x207   : > { %v1183_v45 = vsel %vm771_vm2, %v1175_v42, %v1168_v3  ;;  %v1177_v53 = vsel %vm771_vm2, %v1173_v49, %v1174_v46  ;;  %v1178_v6 = vsel %vm771_vm2, %v1172_v39, %v1173_v49  ;;  %v1176_v38 = vsel %vm771_vm2, %v1174_v46, %v1175_v42 }
 0x208   : > { %v1247_v54 = vadd.f32 %v1239_v50, %v1667_v19  ;;  %v1210_v56 = vadd.f32 %v1194_v52, %v1180_v10  ;;  %v1211_v58 = vadd.f32 %v1203_v13, %v1195_v43  ;;  %v1068_v59 = vpop.f32.mrb[24].mxu0  ;;  %v1205_v17 = vmul.f32 %v1875_v23, %v1177_v53 }
 0x209   : > { %v1156_v51 = vrot.slane %v1068_v59, 7  ;;  %v1070_v61 = vpop.f32.mrb[25].mxu0  ;;  %v1207_v53 = vmul.f32 %v1893_v63, %v1183_v45 }
 0x20a   : > { %v1255_v55 = vmax.f32 %v1247_v54, 0.0  ;;  %v1225_v0 = vmul.f32 %v1942_v21, %v1210_v56  ;;  %v1226_v1 = vmul.f32 %v1942_v21, %v1211_v58  ;;  %v1072_v3 = vpop.f32.mrb[26].mxu0 }
 0x20b   : > { %v1163_v19 = vsel %vm754_vm0, %v1155_v5, %v1156_v51  ;;  %v1157_v2 = vrot.slane %v1072_v3, 7  ;;  %v1074_v7 = vpop.f32.mrb[27].mxu0 }
 0x20c   : > { %1263 = vst [vmem:[%s1973_s13 + $0x8] sm:$0xff] %v1255_v55  ;;  %v1240_v9 = vadd.f32 %v1947_v36, %v1225_v0  ;;  %v1241_v10 = vadd.f32 %v1947_v36, %v1226_v1  ;;  %v1188_v12 = vmul.f32 %v1870_v20, %v1163_v19 }
 0x20d   : > { %v1162_v11 = vsel %vm754_vm0, %v1156_v51, %v1157_v2 }
 0x20e   : > { %v1248_v22 = vadd.f32 %v1240_v9, %v1693_v28  ;;  %v1249_v26 = vadd.f32 %v1241_v10, %v1696_v29  ;;  %v1196_v24 = vadd.f32 %v1188_v12, %v1070_v61  ;;  %v1197_v27 = vadd.f32 %v1162_v11, %v1074_v7 }
 0x210   : > { %v1256_v33 = vmax.f32 %v1248_v22, 0.0  ;;  %v1257_v32 = vmax.f32 %v1249_v26, 0.0  ;;  %v1212_v25 = vadd.f32 %v1196_v24, %v1178_v6  ;;  %v1213_v5 = vadd.f32 %v1205_v17, %v1197_v27  ;;  %v1078_v39 = vpop.f32.mrb[28].mxu0 }
 0x211   : > { %v1158_v40 = vrot.slane %v1078_v39, 7  ;;  %v1080_v4 = vpop.f32.mrb[29].mxu0 }
 0x212   : > { %1264 = vst [vmem:[%s1973_s13 + $0x10] sm:$0xff] %v1256_v33  ;;  %1265 = vst [vmem:[%s1973_s13 + $0x18] sm:$0xff] %v1257_v32  ;;  %v1227_v20 = vmul.f32 %v1942_v21, %v1212_v25  ;;  %v1228_v41 = vmul.f32 %v1942_v21, %v1213_v5  ;;  %v1082_v23 = vpop.f32.mrb[30].mxu0 }
 0x213   : > { %v1161_v28 = vsel %vm754_vm0, %v1157_v2, %v1158_v40  ;;  %v1159_v29 = vrot.slane %v1082_v23, 7  ;;  %v1084_v16 = vpop.f32.mrb[31].mxu0 }
 0x214   : > { %v1242_v42 = vadd.f32 %v1947_v36, %v1227_v20  ;;  %v1243_v44 = vadd.f32 %v1947_v36, %v1228_v41  ;;  %v1190_v46 = vmul.f32 %v1890_v60, %v1161_v28 }
 0x215   : > { %v1167_v47 = vsel %vm754_vm0, %v1159_v29, %v1152_v57  ;;  %v1160_v48 = vsel %vm754_vm0, %v1158_v40, %v1159_v29 }
 0x216   : > { %v1250_v49 = vadd.f32 %v1242_v42, %v1699_v30  ;;  %v1251_v50 = vadd.f32 %v1243_v44, %v1702_v31  ;;  %v1198_v52 = vadd.f32 %v1190_v46, %v1080_v4  ;;  %v1184_v43 = vmul.f32 %v1900_v8, %v1167_v47 }
 0x217   : > { %v1199_v13 = vadd.f32 %v1160_v48, %v1084_v16 }
 0x218   : > { %v1258_v6 = vmax.f32 %v1250_v49, 0.0  ;;  %v1259_v60 = vmax.f32 %v1251_v50, 0.0  ;;  %v1214_v54 = vadd.f32 %v1198_v52, %v1176_v38  ;;  %v1192_v37 = vadd.f32 %v1184_v43, %v1923_v14 }
 0x219   : > { %v1215_v57 = vadd.f32 %v1207_v53, %v1199_v13 }
 0x21a   : > { %1266 = vst [vmem:[%s1973_s13 + $0x20] sm:$0xff] %v1258_v6  ;;  %1267 = vst [vmem:[%s1973_s13 + $0x28] sm:$0xff] %v1259_v60  ;;  %v1229_v30 = vmul.f32 %v1942_v21, %v1214_v54  ;;  %v1208_v31 = vadd.f32 %v1192_v37, %v1936_v15 }
 0x21b   : > { %v1230_v62 = vmul.f32 %v1942_v21, %v1215_v57 }
 0x21c   : > { %v1244_v8 = vadd.f32 %v1947_v36, %v1229_v30  ;;  %v1223_v63 = vmul.f32 %v1942_v21, %v1208_v31 }
 0x21d   : > { %v1245_v45 = vadd.f32 %v1947_v36, %v1230_v62 }
 0x21e   : > { %v1252_v14 = vadd.f32 %v1244_v8, %v1710_v34  ;;  %v1238_v38 = vadd.f32 %v1947_v36, %v1223_v63 }
 0x21f   : > { %v1253_v56 = vadd.f32 %v1245_v45, %v1713_v35 }
 0x220   : > { %v1260_v58 = vmax.f32 %v1252_v14, 0.0  ;;  %v1246_v59 = vadd.f32 %v1238_v38, %v1664_v18 }
 0x221   : > { %v1261_v51 = vmax.f32 %v1253_v56, 0.0 }
 0x222   : > { %1268 = vst [vmem:[%s1973_s13 + $0x30] sm:$0xff] %v1260_v58  ;;  %v1254_v15 = vmax.f32 %v1246_v59, 0.0 }
 0x223   : > { %1269 = vst [vmem:[%s1973_s13 + $0x38] sm:$0xff] %v1261_v51 }
 0x224   : > { %1262 = vst [vmem:[%s1973_s13] sm:$0xff] %v1254_v15 }
 0x225 PF: > { %s17_s24 = sadd.s32 1, %s1549_s24  }
 0x226   : > { %p14_p4 = scmp.ge.s32.totalorder %s17_s24, 4  }
 0x228   :  { %16 = sbr.rel (!%p14_p4) target bundleno = 1 (0x1), region = 78 }

</bundles_post_ra>
